<compile_context>
chip_gen: v6e
topology: v6e:2x2x1
jax: 0.10.0
libtpu: 0.0.40
codegen_flags: <defaults>
</compile_context>

<pallas_src>
import jax
import jax.numpy as jnp
import numpy as np
from jax.experimental import pallas as pl
from jax.experimental.pallas import tpu as pltpu


TILE_N = 128                       # lane-dense output tile width
_VMEM_BUDGET = 40 * 1024 * 1024    # double-buffered working-set budget (fits v7x)
_VMEM_LIMIT = 48 * 1024 * 1024     # scoped VMEM cap handed to Mosaic


def _round_up(v, m):
    return ((v + m - 1) // m) * m


def avg_pool1d(x, kernel_size, stride=None, padding=0, *, tile_m=512):
    """Matches torch.nn.functional.avg_pool1d(x, kernel_size, stride, padding).

    x: (N, C, L) float array.
    """
    if stride is None:
        stride = kernel_size
    k, s, p = int(kernel_size), int(stride), int(padding)
    n, c, l = x.shape
    l_out = (l + 2 * p - k) // s + 1
    assert l_out >= 1, "output length must be >= 1"

    dtype = x.dtype
    itemsize = jnp.dtype(dtype).itemsize
    m = n * c

    # ---- input: only the semantic zero padding is ever materialized ------------
    x2d = x.reshape(m, l)
    if p > 0:
        x2d = jnp.pad(x2d, ((0, 0), (p, p)))
    l_valid = l + 2 * p                       # width of the (padded) input columns

    # ---- tiling -----------------------------------------------------------------
    n_tiles = pl.cdiv(l_out, TILE_N)          # output-length tiles
    delta = TILE_N * s                        # input advance per output tile
    kb_a = delta                              # main input block width (lane multiple)
    overlap = max(k - s, 0)
    has_overlap = overlap > 0
    if has_overlap:
        c0 = -(-overlap // TILE_N)
        kb_b = TILE_N * c0 if delta % (TILE_N * c0) == 0 else delta
        assert overlap <= kb_b, "kernel_size too large relative to stride"
        step_b = delta // kb_b                # block-index stride for overlap spec
    else:
        kb_b, step_b = 0, 0

    sub = max(8, 32 // itemsize)              # sublane multiple for this dtype
    tile_m = _round_up(min(int(tile_m), max(m, 1)), sub)

    def _working_set(tm):                     # double-buffered inputs/outputs + weights
        per_step = tm * (kb_a + kb_b + TILE_N) * itemsize
        w_bytes = (kb_a + kb_b) * TILE_N * itemsize
        return 2 * per_step + 2 * w_bytes

    while tile_m > sub and _working_set(tile_m) > _VMEM_BUDGET:
        tile_m = max(sub, _round_up(tile_m // 2, sub))

    n_row_tiles = pl.cdiv(m, tile_m)
    if n_row_tiles == 1 and m >= 256:         # give v7x megacore >= 2 row tiles
        tile_m = _round_up(-(-m // 2), sub)
        n_row_tiles = pl.cdiv(m, tile_m)

    # ---- shift-invariant banded weights (1.0 band; scaled by 1/k in-kernel) ------
    wa_np = np.zeros((kb_a, TILE_N), np.float32)
    wb_np = np.zeros((kb_b, TILE_N), np.float32) if has_overlap else None
    for t in range(TILE_N):
        wa_np[t * s: min(t * s + k, kb_a), t] = 1.0
        if has_overlap:
            lo2, hi2 = max(t * s - kb_a, 0), min(t * s - kb_a + k, kb_b)
            if hi2 > lo2:
                wb_np[lo2:hi2, t] = 1.0
    wa = jnp.asarray(wa_np, dtype=dtype)
    wb = jnp.asarray(wb_np, dtype=dtype) if has_overlap else None

    inv_k = float(1.0 / k)
    prec = (jax.lax.Precision.HIGHEST if itemsize >= 4
            else jax.lax.Precision.DEFAULT)

    # Static flags: can a fetched input block ever reach past the real columns?
    mask_a = n_tiles * kb_a > l_valid
    mask_b = has_overlap and (n_tiles * delta + kb_b > l_valid)

    def _mask_cols(vals, width, start):
        cols = jax.lax.broadcasted_iota(jnp.int32, (1, width), 1) + start
        return jnp.where(cols < l_valid, vals, jnp.zeros_like(vals))

    def _kernel_overlap(xa_ref, xb_ref, wa_ref, wb_ref, o_ref):
        j = pl.program_id(1)
        xa = xa_ref[...]
        if mask_a:
            xa = _mask_cols(xa, kb_a, j * delta)
        acc = jnp.dot(xa, wa_ref[...], preferred_element_type=jnp.float32,
                      precision=prec)
        xb = xb_ref[...]
        if mask_b:
            xb = _mask_cols(xb, kb_b, (j + 1) * delta)
        acc = acc + jnp.dot(xb, wb_ref[...], preferred_element_type=jnp.float32,
                            precision=prec)
        o_ref[...] = (acc * inv_k).astype(o_ref.dtype)

    def _kernel_simple(xa_ref, wa_ref, o_ref):
        j = pl.program_id(1)
        xa = xa_ref[...]
        if mask_a:
            xa = _mask_cols(xa, kb_a, j * delta)
        acc = jnp.dot(xa, wa_ref[...], preferred_element_type=jnp.float32,
                      precision=prec)
        o_ref[...] = (acc * inv_k).astype(o_ref.dtype)

    xa_spec = pl.BlockSpec((tile_m, kb_a), lambda i, j: (i, j))
    w_a_spec = pl.BlockSpec((kb_a, TILE_N), lambda i, j: (0, 0))
    out_spec = pl.BlockSpec((tile_m, TILE_N), lambda i, j: (i, j))

    if has_overlap:
        # Clamp so the overlap DMA never starts past the array; when clamped, all
        # intended columns are >= l_valid and the in-kernel mask zeroes them out.
        xb_last = max(pl.cdiv(l_valid, kb_b) - 1, 0)
        xb_spec = pl.BlockSpec(
            (tile_m, kb_b),
            lambda i, j: (i, jnp.minimum((j + 1) * step_b, xb_last)))
        w_b_spec = pl.BlockSpec((kb_b, TILE_N), lambda i, j: (0, 0))
        kernel = _kernel_overlap
        in_specs = [xa_spec, xb_spec, w_a_spec, w_b_spec]
        operands = (x2d, x2d, wa, wb)
    else:
        kernel = _kernel_simple
        in_specs = [xa_spec, w_a_spec]
        operands = (x2d, wa)

    out2d = pl.pallas_call(
        kernel,
        out_shape=jax.ShapeDtypeStruct((m, l_out), dtype),
        grid_spec=pltpu.PrefetchScalarGridSpec(
            num_scalar_prefetch=0,
            grid=(n_row_tiles, n_tiles),
            in_specs=in_specs,
            out_specs=out_spec,
        ),
        compiler_params=pltpu.CompilerParams(
            dimension_semantics=("parallel", "parallel"),
            vmem_limit_bytes=_VMEM_LIMIT,
        ),
    )(*operands)

    return out2d.reshape(n, c, l_out)


def _reference_avg_pool1d(x, kernel_size, stride, padding):
    # Pure-JAX reference matching F.avg_pool1d (count_include_pad=True).
    if stride is None:
        stride = kernel_size
    x_p = jnp.pad(x, ((0, 0), (0, 0), (padding, padding)))
    l_pad = x_p.shape[-1]
    l_out = (l_pad - kernel_size) // stride + 1
    cols = [
        x_p[..., j * stride: j * stride + kernel_size].sum(-1) / kernel_size
        for j in range(l_out)
    ]
    return jnp.stack(cols, axis=-1)


if __name__ == "__main__":
    key = jax.random.PRNGKey(0)
    N, C, L = 2, 4, 16
    x = jax.random.normal(key, (N, C, L), dtype=jnp.float32)

    # (kernel_size, stride, padding): overlap + padding, default stride
    # (no overlap, no pad), and overlap without pad (masked-tail path).
    configs = [(4, 2, 1), (4, None, 0), (3, 1, 0)]
    for ks, st, pd in configs:
        out = avg_pool1d(x, ks, stride=st, padding=pd)
        out = jax.block_until_ready(out)
        ref = _reference_avg_pool1d(x, ks, st, pd)
        np.testing.assert_allclose(np.asarray(out), np.asarray(ref),
                                   rtol=1e-5, atol=1e-5)

    print("KERNEL_OK")
</pallas_src>

<mosaic_0001>
module attributes {stable_mosaic.version = 11 : i64} {
  func.func @_kernel_overlap(%arg0: i32, %arg1: i32, %arg2: memref<8x256xf32, #tpu.memory_space<vmem>>, %arg3: memref<8x128xf32, #tpu.memory_space<vmem>>, %arg4: memref<256x128xf32, #tpu.memory_space<vmem>>, %arg5: memref<128x128xf32, #tpu.memory_space<vmem>>, %arg6: memref<8x128xf32, #tpu.memory_space<vmem>>) attributes {dimension_semantics = [#tpu.dimension_semantics<parallel>, #tpu.dimension_semantics<parallel>], iteration_bounds = array<i64: 1, 1>, scalar_prefetch = 0 : i64, scratch_operands = 0 : i64, tpu.core_type = #tpu.core_type<tc>, window_params = [{transform_indices = @transform_0, window_bounds = array<i64: 8, 256>}, {transform_indices = @transform_1, window_bounds = array<i64: 8, 128>}, {pipeline_mode = #tpu.pipeline_mode<synchronous>, transform_indices = @transform_2, window_bounds = array<i64: 256, 128>}, {pipeline_mode = #tpu.pipeline_mode<synchronous>, transform_indices = @transform_3, window_bounds = array<i64: 128, 128>}, {transform_indices = @transform_4, window_bounds = array<i64: 8, 128>}]} {
    %c0 = arith.constant 0 : index
    %c0_0 = arith.constant 0 : index
    %0 = vector.load %arg2[%c0, %c0_0] : memref<8x256xf32, #tpu.memory_space<vmem>>, vector<8x256xf32>
    %c256_i32 = arith.constant 256 : i32
    %1 = arith.muli %arg1, %c256_i32 : i32
    %2 = tpu.iota {dimensions = array<i32: 1>} : vector<1x256xi32>
    %3 = vector.broadcast %1 : i32 to vector<1x256xi32>
    %4 = arith.addi %2, %3 : vector<1x256xi32>
    %c18_i32 = arith.constant 18 : i32
    %5 = vector.broadcast %c18_i32 : i32 to vector<1x256xi32>
    %6 = arith.cmpi slt, %4, %5 : vector<1x256xi32>
    %cst = arith.constant 0.000000e+00 : f32
    %7 = vector.broadcast %cst : f32 to vector<8x256xf32>
    %8 = vector.shape_cast %6 : vector<1x256xi1> to vector<1x256xi1>
    %9 = vector.broadcast %8 : vector<1x256xi1> to vector<8x256xi1>
    %10 = arith.select %9, %0, %7 : vector<8x256xi1>, vector<8x256xf32>
    %c0_1 = arith.constant 0 : index
    %c0_2 = arith.constant 0 : index
    %11 = vector.load %arg4[%c0_1, %c0_2] : memref<256x128xf32, #tpu.memory_space<vmem>>, vector<256x128xf32>
    %cst_3 = arith.constant dense<0.000000e+00> : vector<8x128xf32>
    %12 = tpu.matmul %10, %11, %cst_3 {dimension_numbers = #tpu.dot_dimension_numbers<[1], [0], [0], [1], [0, 0, 1, 1], [], []>, precision = #tpu.contract_precision<fp32>} : vector<8x256xf32>, vector<256x128xf32>, vector<8x128xf32> -> vector<8x128xf32>
    %c0_4 = arith.constant 0 : index
    %c0_5 = arith.constant 0 : index
    %13 = vector.load %arg3[%c0_4, %c0_5] : memref<8x128xf32, #tpu.memory_space<vmem>>, vector<8x128xf32>
    %c1_i32 = arith.constant 1 : i32
    %14 = arith.addi %arg1, %c1_i32 : i32
    %c256_i32_6 = arith.constant 256 : i32
    %15 = arith.muli %14, %c256_i32_6 : i32
    %16 = tpu.iota {dimensions = array<i32: 1>} : vector<1x128xi32>
    %17 = vector.broadcast %15 : i32 to vector<1x128xi32>
    %18 = arith.addi %16, %17 : vector<1x128xi32>
    %c18_i32_7 = arith.constant 18 : i32
    %19 = vector.broadcast %c18_i32_7 : i32 to vector<1x128xi32>
    %20 = arith.cmpi slt, %18, %19 : vector<1x128xi32>
    %cst_8 = arith.constant 0.000000e+00 : f32
    %21 = vector.broadcast %cst_8 : f32 to vector<8x128xf32>
    %22 = vector.shape_cast %20 : vector<1x128xi1> to vector<1x128xi1>
    %23 = vector.broadcast %22 : vector<1x128xi1> to vector<8x128xi1>
    %24 = arith.select %23, %13, %21 : vector<8x128xi1>, vector<8x128xf32>
    %c0_9 = arith.constant 0 : index
    %c0_10 = arith.constant 0 : index
    %25 = vector.load %arg5[%c0_9, %c0_10] : memref<128x128xf32, #tpu.memory_space<vmem>>, vector<128x128xf32>
    %cst_11 = arith.constant dense<0.000000e+00> : vector<8x128xf32>
    %26 = tpu.matmul %24, %25, %cst_11 {dimension_numbers = #tpu.dot_dimension_numbers<[1], [0], [0], [1], [0, 0, 1, 1], [], []>, precision = #tpu.contract_precision<fp32>} : vector<8x128xf32>, vector<128x128xf32>, vector<8x128xf32> -> vector<8x128xf32>
    %27 = arith.addf %12, %26 : vector<8x128xf32>
    %cst_12 = arith.constant 2.500000e-01 : f32
    %28 = vector.broadcast %cst_12 : f32 to vector<8x128xf32>
    %29 = arith.mulf %27, %28 : vector<8x128xf32>
    %c0_13 = arith.constant 0 : index
    %c0_14 = arith.constant 0 : index
    %30 = vector.load %arg6[%c0_13, %c0_14] : memref<8x128xf32, #tpu.memory_space<vmem>>, vector<8x128xf32>
    tpu.vector_store %arg6[%c0_13, %c0_14], %29 {strides = array<i32>} : memref<8x128xf32, #tpu.memory_space<vmem>>, vector<8x128xf32>,
    return
  }
  func.func @transform_0(%arg0: i32, %arg1: i32) -> (i32, i32) {
    %c0_i32 = arith.constant 0 : i32
    return %arg0, %arg1 : i32, i32
  }
  func.func @transform_1(%arg0: i32, %arg1: i32) -> (i32, i32) {
    %c1_i32 = arith.constant 1 : i32
    %0 = arith.addi %arg1, %c1_i32 : i32
    %c2_i32 = arith.constant 2 : i32
    %1 = arith.muli %0, %c2_i32 : i32
    %c0_i32 = arith.constant 0 : i32
    %2 = arith.minsi %1, %c0_i32 : i32
    %c0_i32_0 = arith.constant 0 : i32
    return %arg0, %2 : i32, i32
  }
  func.func @transform_2(%arg0: i32, %arg1: i32) -> (i32, i32) {
    %c0_i32 = arith.constant 0 : i32
    %c0_i32_0 = arith.constant 0 : i32
    %c0_i32_1 = arith.constant 0 : i32
    return %c0_i32, %c0_i32_0 : i32, i32
  }
  func.func @transform_3(%arg0: i32, %arg1: i32) -> (i32, i32) {
    %c0_i32 = arith.constant 0 : i32
    %c0_i32_0 = arith.constant 0 : i32
    %c0_i32_1 = arith.constant 0 : i32
    return %c0_i32, %c0_i32_0 : i32, i32
  }
  func.func @transform_4(%arg0: i32, %arg1: i32) -> (i32, i32) {
    %c0_i32 = arith.constant 0 : i32
    return %arg0, %arg1 : i32, i32
  }
}

</mosaic_0001>

<bundles_post_ra>
// kernel: tpu_custom_call.1
= control target key start
LH: loop header
LB: loop body
LE: loop exit
PB: predicated region body
PF: predicated region fallthrough
CT: control target
= control target key end

     0   :  { %9 = vsyncpa [#allocation3], 0  ;;  %s3277_s0 = inlined_call_operand.hbm [shape: f32[8,18], index: 0, kind: input, shape index: {}]   ;;  %s3278_s1 = inlined_call_operand.hbm [shape: f32[8,18], index: 1, kind: input, shape index: {}]   ;;  %s3279_s2 = inlined_call_operand.hbm [shape: f32[256,128], index: 2, kind: input, shape index: {}]   ;;  %s3280_s3 = inlined_call_operand.hbm [shape: f32[128,128], index: 3, kind: input, shape index: {}]   ;;  %s3281_s4 = inlined_call_operand.hbm [shape: f32[8,8], index: 4, kind: output, shape index: {}]  }
   0x1   :  { %10 = vsyncpa [#allocation6], 0 }
   0x2   :  { %11 = vsyncpa [#allocation9], 0 }
   0x3   :  { %12 = vsyncpa [#allocation4], 0 }
   0x4   :  { %17 = vsyncadd [#allocation3], 128  ;;  %s2316_s15 = smov [#allocation5]   ;;  %s2317_s17 = smov [#allocation2]  }
   0x5   :  { %s35_s16 = sshll.u32 %s2316_s15, 4  ;;  %s19_s18 = sshll.u32 %s2317_s17, 4  ;;  %s36_s16 = int_to_ptr.vmem [resolvable:$true] %s35_s16  ;;  %s20_s18 = int_to_ptr.vmem [resolvable:$true] %s19_s18 }
   0x6   :  { %s2216_s19 = scalar_lea.vmem %s36_s16, 128  ;;  %p2221_p1 = scmp.lt.s32.totalorder %s36_s16, %s36_s16 }
   0x7   :  { %p2217_p0 = scmp.ne.s32.totalorder %s36_s16, %s2216_s19  ;;  %p2222_p2 = scmp.lt.s32.totalorder %s2216_s19, %s2216_s19 }
   0x9   :  { %p2223_p3 = por %p2222_p2, %p2221_p1 }
   0xb   :  { %p2224_p4 = pnand %p2223_p3, %p2217_p0 }
   0xd   :  { %2227 = shalt.err (!%p2224_p4)
}
   0xe   :  { %38 = dma.hbm_to_vmem [thread:$0]  %s3278_s1, 128, %s36_s16, [#allocation6]  }
   0xf   :  { %s2236_s22 = scalar_lea.vmem %s20_s18, 128  ;;  %s2240_s23 = scalar_lea.vmem %s20_s18, 256 }
  0x10   :  { %p2237_p5 = scmp.ne.s32.totalorder %s20_s18, %s2236_s22  ;;  %p2241_p6 = scmp.lt.s32.totalorder %s20_s18, %s20_s18 }
  0x11   :  { %p2242_p7 = scmp.lt.s32.totalorder %s2240_s23, %s2236_s22 }
  0x13   :  { %p2243_p8 = por %p2242_p7, %p2241_p6 }
  0x15   :  { %p2244_p9 = pnand %p2243_p8, %p2237_p5 }
  0x17   :  { %2247 = shalt.err (!%p2244_p9)
}
  0x18   :  { %22 = dma.hbm_to_vmem [thread:$0]  %s3277_s0, 128, %s20_s18, [#allocation3]  }
  0x19   :  { %s2318_s26 = smov [#allocation7]  }
  0x1a   :  { %s44_s27 = sshll.u32 %s2318_s26, 4  ;;  %s45_s27 = int_to_ptr.vmem [resolvable:$true] %s44_s27 }
  0x1b   :  { %s2256_s28 = scalar_lea.vmem %s45_s27, 4096  ;;  %p2261_p11 = scmp.lt.s32.totalorder %s45_s27, %s45_s27 }
  0x1c   :  { %p2257_p10 = scmp.ne.s32.totalorder %s45_s27, %s2256_s28  ;;  %p2262_p12 = scmp.lt.s32.totalorder %s2256_s28, %s2256_s28 }
  0x1e   :  { %p2263_p13 = por %p2262_p12, %p2261_p11 }
  0x20   :  { %p2264_p0 = pnand %p2263_p13, %p2257_p10 }
  0x22   :  { %2267 = shalt.err (!%p2264_p0)
}
  0x23   :  { %s2319_s1 = smov 128   ;;  %s2320_s29 = smov 8  }
  0x24   :  { %50 = dma.hbm_to_vmem [thread:$0]  %s3279_s2, 4096, %s45_s27, [#allocation6], %s2319_s1, %s2319_s1, %s2320_s29  }
  0x25   :  { %s2321_s6 = smov [#allocation8]  }
  0x26   :  { %s56_s7 = sshll.u32 %s2321_s6, 4  ;;  %s57_s7 = int_to_ptr.vmem [resolvable:$true] %s56_s7 }
  0x27   :  { %s2276_s0 = scalar_lea.vmem %s57_s7, 2048  ;;  %p2281_p2 = scmp.lt.s32.totalorder %s57_s7, %s57_s7 }
  0x28   :  { %p2277_p1 = scmp.ne.s32.totalorder %s57_s7, %s2276_s0  ;;  %p2282_p3 = scmp.lt.s32.totalorder %s2276_s0, %s2276_s0 }
  0x2a   :  { %p2283_p4 = por %p2282_p3, %p2281_p2 }
  0x2c   :  { %p2284_p5 = pnand %p2283_p4, %p2277_p1 }
  0x2e   :  { %2287 = shalt.err (!%p2284_p5)
}
  0x2f   :  { %62 = dma.hbm_to_vmem [thread:$0]  %s3280_s3, 2048, %s57_s7, [#allocation9], %s2319_s1, %s2319_s1, %s2320_s29  }
  0x30   :  { %2308 = dma.done.wait [#allocation3], 256  }
  0x31   :  { %2309 = vsyncadd [#allocation3], 4294967040 }
  0x32   :  { %2310 = dma.done.wait [#allocation6], 4224  }
  0x33   :  { %2311 = vsyncadd [#allocation6], 4294963072 }
  0x34   :  { %2312 = dma.done.wait [#allocation9], 2048  }
  0x35   :  { %2313 = vsyncadd [#allocation9], 4294965248  ;;  %v3295_v0 = vmov 0.0   ;;  %vm2323_vm0 = vmmov 0   ;;  %v152_v1 = vld [vmem:[#allocation8 + $0x78] sm:$0xff]  ;;  %v151_v2 = vld [vmem:[#allocation8 + $0x70] sm:$0xff] }
  0x36   :  { %1989 = vmatprep.subr.mxu0 %v3295_v0  ;;  %2024 = vmatprep.subr.mxu1 %v3295_v0  ;;  %v150_v3 = vld [vmem:[#allocation8 + $0x68] sm:$0xff]  ;;  %v2368_v4 = vand.u32 4294901760, %v152_v1  ;;  %v2370_v5 = vand.u32 4294901760, %v151_v2  ;;  %v149_v7 = vld [vmem:[#allocation8 + $0x60] sm:$0xff]  ;;  %v148_v8 = vld [vmem:[#allocation8 + $0x58] sm:$0xff]  ;;  %s2324_s2 = smov [#allocation10]  }
  0x37   :  { %2021 = vmatprep.mubr.msk.f32.mxu0 %vm2323_vm0, %v3295_v0  ;;  %2056 = vmatprep.mubr.msk.f32.mxu1 %vm2323_vm0, %v3295_v0  ;;  %v2372_v6 = vand.u32 4294901760, %v150_v3  ;;  %v147_v9 = vld [vmem:[#allocation8 + $0x50] sm:$0xff]  ;;  %v2374_v10 = vand.u32 4294901760, %v149_v7  ;;  %v2376_v11 = vand.u32 4294901760, %v148_v8  ;;  %v146_v13 = vld [vmem:[#allocation8 + $0x48] sm:$0xff]  ;;  %v145_v14 = vld [vmem:[#allocation8 + $0x40] sm:$0xff] }
  0x38   :  { %v2378_v12 = vand.u32 4294901760, %v147_v9  ;;  %1990 = vmatpush3.msra.mxu0 %v2368_v4  ;;  %v2382_v15 = vsub.f32 %v152_v1, %v2368_v4  ;;  %v2385_v16 = vsub.f32 %v151_v2, %v2370_v5  ;;  %v2387_v17 = vand.u32 4294901760, %v146_v13  ;;  %v144_v19 = vld [vmem:[#allocation8 + $0x38] sm:$0xff]  ;;  %v143_v26 = vld [vmem:[#allocation8 + $0x30] sm:$0xff]  ;;  %v142_v36 = vld [vmem:[#allocation8 + $0x28] sm:$0xff]  ;;  %s1664_s3 = sshll.u32 %s2324_s2, 4  ;;  %s1665_s3 = int_to_ptr.vmem [resolvable:$true] %s1664_s3 }
  0x39   :  { %v2390_v18 = vsub.f32 %v150_v3, %v2372_v6  ;;  %1991 = vmatprep.subr.mxu0 %v3295_v0  ;;  %v2394_v20 = vsub.f32 %v149_v7, %v2374_v10  ;;  %v2397_v21 = vsub.f32 %v148_v8, %v2376_v11  ;;  %v2403_v25 = vand.u32 4294901760, %v145_v14  ;;  %v141_v41 = vld [vmem:[#allocation8 + $0x20] sm:$0xff]  ;;  %v140_v49 = vld [vmem:[#allocation8 + $0x18] sm:$0xff]  ;;  %v139_v53 = vld [vmem:[#allocation8 + $0x10] sm:$0xff]  ;;  %s2288_s10 = scalar_lea.vmem %s1665_s3, 128  ;;  %p2293_p7 = scmp.lt.s32.totalorder %s1665_s3, %s1665_s3 }
  0x3a   :  { %1992 = vmatpush3.msra.mxu0 %v2370_v5  ;;  %v247_v22 = vand.u32 4294901760, %v2382_v15  ;;  %v254_v23 = vand.u32 4294901760, %v2385_v16  ;;  %v2407_v28 = vand.u32 4294901760, %v144_v19  ;;  %v2411_v30 = vsub.f32 %v147_v9, %v2378_v12  ;;  %v138_v59 = vld [vmem:[#allocation8 + $0x8] sm:$0xff]  ;;  %v137_v2 = vld [vmem:[#allocation8] sm:$0xff]  ;;  %p2289_p6 = scmp.ne.s32.totalorder %s1665_s3, %s2288_s10  ;;  %p2294_p8 = scmp.lt.s32.totalorder %s2288_s10, %s2288_s10 }
  0x3b   :  { %v261_v24 = vand.u32 4294901760, %v2390_v18  ;;  %1993 = vmatprep.subr.mxu0 %v3295_v0  ;;  %v268_v27 = vand.u32 4294901760, %v2394_v20  ;;  %v275_v29 = vand.u32 4294901760, %v2397_v21  ;;  %v2424_v34 = vsub.f32 %v146_v13, %v2387_v17 }
  0x3c   :  { %1994 = vmatpush3.msra.mxu0 %v2372_v6  ;;  %v248_v31 = vsub.f32 %v2382_v15, %v247_v22  ;;  %v255_v32 = vsub.f32 %v2385_v16, %v254_v23  ;;  %v2427_v35 = vand.u32 4294901760, %v143_v26  ;;  %v282_v40 = vand.u32 4294901760, %v2411_v30  ;;  %p2295_p9 = por %p2294_p8, %p2293_p7 }
  0x3d   :  { %v262_v33 = vsub.f32 %v2390_v18, %v261_v24  ;;  %1995 = vmatprep.subr.mxu0 %v3295_v0  ;;  %v269_v39 = vsub.f32 %v2394_v20, %v268_v27  ;;  %v276_v42 = vsub.f32 %v2397_v21, %v275_v29  ;;  %v2439_v43 = vsub.f32 %v145_v14, %v2403_v25 }
  0x3e   :  { %1996 = vmatpush3.msra.mxu0 %v2374_v10  ;;  %v249_v37 = vand.u32 4294901760, %v248_v31  ;;  %v256_v38 = vand.u32 4294901760, %v255_v32  ;;  %v2442_v45 = vand.u32 4294901760, %v142_v36  ;;  %v289_v46 = vand.u32 4294901760, %v2424_v34  ;;  %p2296_p10 = pnand %p2295_p9, %p2289_p6 }
  0x3f   :  { %1997 = vmatprep.subr.mxu0 %v3295_v0  ;;  %v263_v44 = vand.u32 4294901760, %v262_v33  ;;  %v2446_v47 = vsub.f32 %v144_v19, %v2407_v28  ;;  %v2450_v48 = vand.u32 4294901760, %v141_v41  ;;  %v270_v50 = vand.u32 4294901760, %v269_v39 }
  0x40   :  { %1998 = vmatpush3.msra.mxu0 %v2376_v11  ;;  %2025 = vmatpush3.msra.mxu1 %v249_v37  ;;  %v283_v51 = vsub.f32 %v2411_v30, %v282_v40  ;;  %v296_v52 = vand.u32 4294901760, %v2439_v43  ;;  %v2458_v54 = vsub.f32 %v143_v26, %v2427_v35  ;;  %v277_v55 = vand.u32 4294901760, %v276_v42 }
  0x41   :  { %1999 = vmatprep.subr.mxu0 %v3295_v0  ;;  %2026 = vmatprep.subr.mxu1 %v3295_v0  ;;  %v290_v56 = vsub.f32 %v2424_v34, %v289_v46  ;;  %v2466_v57 = vand.u32 4294901760, %v140_v49  ;;  %v303_v58 = vand.u32 4294901760, %v2446_v47  ;;  %v2470_v60 = vsub.f32 %v142_v36, %v2442_v45 }
  0x42   :  { %2000 = vmatpush3.msra.mxu0 %v2378_v12  ;;  %2027 = vmatpush3.msra.mxu1 %v256_v38  ;;  %v2474_v61 = vand.u32 4294901760, %v139_v53  ;;  %v284_v62 = vand.u32 4294901760, %v283_v51  ;;  %v297_v63 = vsub.f32 %v2439_v43, %v296_v52  ;;  %v310_v1 = vand.u32 4294901760, %v2458_v54 }
  0x43   :  { %2001 = vmatprep.subr.mxu0 %v3295_v0  ;;  %2028 = vmatprep.subr.mxu1 %v3295_v0  ;;  %v2482_v3 = vsub.f32 %v141_v41, %v2450_v48  ;;  %v2486_v7 = vand.u32 4294901760, %v138_v59  ;;  %v291_v8 = vand.u32 4294901760, %v290_v56  ;;  %v304_v9 = vsub.f32 %v2446_v47, %v303_v58 }
  0x44   :  { %2002 = vmatpush3.msra.mxu0 %v2387_v17  ;;  %2029 = vmatpush3.msra.mxu1 %v263_v44  ;;  %v317_v13 = vand.u32 4294901760, %v2470_v60  ;;  %v2494_v14 = vsub.f32 %v140_v49, %v2466_v57  ;;  %v2498_v19 = vand.u32 4294901760, %v137_v2  ;;  %v298_v26 = vand.u32 4294901760, %v297_v63 }
  0x45   :  { %2003 = vmatprep.subr.mxu0 %v3295_v0  ;;  %2030 = vmatprep.subr.mxu1 %v3295_v0  ;;  %v311_v31 = vsub.f32 %v2458_v54, %v310_v1  ;;  %v324_v32 = vand.u32 4294901760, %v2482_v3  ;;  %v2506_v33 = vsub.f32 %v139_v53, %v2474_v61  ;;  %v305_v36 = vand.u32 4294901760, %v304_v9 }
  0x46   :  { %2004 = vmatpush3.msra.mxu0 %v2403_v25  ;;  %2031 = vmatpush3.msra.mxu1 %v270_v50  ;;  %v318_v37 = vsub.f32 %v2470_v60, %v317_v13  ;;  %v331_v38 = vand.u32 4294901760, %v2494_v14  ;;  %v2516_v39 = vsub.f32 %v138_v59, %v2486_v7  ;;  %v2526_v49 = vsub.f32 %v137_v2, %v2498_v19 }
  0x47   :  { %2005 = vmatprep.subr.mxu0 %v3295_v0  ;;  %2032 = vmatprep.subr.mxu1 %v3295_v0  ;;  %v312_v41 = vand.u32 4294901760, %v311_v31  ;;  %v325_v42 = vsub.f32 %v2482_v3, %v324_v32  ;;  %v338_v44 = vand.u32 4294901760, %v2506_v33 }
  0x48   :  { %2006 = vmatpush3.msra.mxu0 %v2407_v28  ;;  %2033 = vmatpush3.msra.mxu1 %v277_v55  ;;  %v319_v50 = vand.u32 4294901760, %v318_v37  ;;  %v332_v51 = vsub.f32 %v2494_v14, %v331_v38  ;;  %v345_v53 = vand.u32 4294901760, %v2516_v39  ;;  %v352_v59 = vand.u32 4294901760, %v2526_v49 }
  0x49   :  { %2007 = vmatprep.subr.mxu0 %v3295_v0  ;;  %2034 = vmatprep.subr.mxu1 %v3295_v0  ;;  %v326_v55 = vand.u32 4294901760, %v325_v42  ;;  %v339_v56 = vsub.f32 %v2506_v33, %v338_v44 }
  0x4a   :  { %2008 = vmatpush3.msra.mxu0 %v2427_v35  ;;  %2035 = vmatpush3.msra.mxu1 %v284_v62  ;;  %v333_v62 = vand.u32 4294901760, %v332_v51  ;;  %v346_v63 = vsub.f32 %v2516_v39, %v345_v53 }
  0x4b   :  { %2009 = vmatprep.subr.mxu0 %v3295_v0  ;;  %2036 = vmatprep.subr.mxu1 %v3295_v0  ;;  %v340_v2 = vand.u32 4294901760, %v339_v56 }
  0x4c   :  { %2010 = vmatpush3.msra.mxu0 %v2442_v45  ;;  %2037 = vmatpush3.msra.mxu1 %v291_v8  ;;  %v353_v8 = vsub.f32 %v2526_v49, %v352_v59  ;;  %v347_v9 = vand.u32 4294901760, %v346_v63  ;;  %v104_v63 = vld [vmem:[#allocation7 + $0x40] sm:$0xff] }
  0x4d   :  { %2011 = vmatprep.subr.mxu0 %v3295_v0  ;;  %2038 = vmatprep.subr.mxu1 %v3295_v0 }
  0x4e   :  { %2012 = vmatpush3.msra.mxu0 %v2450_v48  ;;  %2039 = vmatpush3.msra.mxu1 %v298_v26  ;;  %v354_v26 = vand.u32 4294901760, %v353_v8  ;;  %v103_v8 = vld [vmem:[#allocation7 + $0x38] sm:$0xff] }
  0x4f   :  { %2013 = vmatprep.subr.mxu0 %v3295_v0  ;;  %2040 = vmatprep.subr.mxu1 %v3295_v0 }
  0x50   :  { %2014 = vmatpush3.msra.mxu0 %v2466_v57  ;;  %2041 = vmatpush3.msra.mxu1 %v305_v36 }
  0x51   :  { %2015 = vmatprep.subr.mxu0 %v3295_v0  ;;  %2042 = vmatprep.subr.mxu1 %v3295_v0 }
  0x52   :  { %2016 = vmatpush3.msra.mxu0 %v2474_v61  ;;  %2043 = vmatpush3.msra.mxu1 %v312_v41 }
  0x53   :  { %2017 = vmatprep.subr.mxu0 %v3295_v0  ;;  %2044 = vmatprep.subr.mxu1 %v3295_v0 }
  0x54   :  { %2018 = vmatpush3.msra.mxu0 %v2486_v7  ;;  %2045 = vmatpush3.msra.mxu1 %v319_v50  ;;  %v120_v50 = vld [vmem:[#allocation7 + $0xc0] sm:$0xff] }
  0x55   :  { %2019 = vmatprep.subr.mxu0 %v3295_v0  ;;  %2046 = vmatprep.subr.mxu1 %v3295_v0 }
  0x56   :  { %2020 = vmatpush3.msra.mxu0 %v2498_v19  ;;  %2047 = vmatpush3.msra.mxu1 %v326_v55 }
  0x57   :  { %2048 = vmatprep.subr.mxu1 %v3295_v0  ;;  %2059 = vmatprep.subr.mxu0 %v3295_v0 }
  0x58   :  { %2022 = vmatmul.mubr.f32.vlgmr.msra.gmra.mxu0 %v3295_v0  ;;  %2049 = vmatpush3.msra.mxu1 %v333_v62 }
  0x59   :  { %2060 = vmatpush3.msra.mxu0 %v2382_v15  ;;  %2050 = vmatprep.subr.mxu1 %v3295_v0  ;;  %v111_v15 = vld [vmem:[#allocation7 + $0x78] sm:$0xff] }
  0x5a   :  { %2061 = vmatprep.subr.mxu0 %v3295_v0  ;;  %2051 = vmatpush3.msra.mxu1 %v340_v2 }
  0x5b   :  { %2062 = vmatpush3.msra.mxu0 %v2385_v16  ;;  %2052 = vmatprep.subr.mxu1 %v3295_v0  ;;  %v110_v16 = vld [vmem:[#allocation7 + $0x70] sm:$0xff] }
  0x5c   :  { %2063 = vmatprep.subr.mxu0 %v3295_v0  ;;  %2053 = vmatpush3.msra.mxu1 %v347_v9 }
  0x5d   :  { %2064 = vmatpush3.msra.mxu0 %v2390_v18  ;;  %2054 = vmatprep.subr.mxu1 %v3295_v0  ;;  %v2669_v18 = vand.u32 4294901760, %v111_v15 }
  0x5e   :  { %2065 = vmatprep.subr.mxu0 %v3295_v0  ;;  %2055 = vmatpush3.msra.mxu1 %v354_v26  ;;  %v79_v26 = vld [vmem:[#allocation2] sm:$0xff] }
  0x5f   :  { %2066 = vmatpush3.msra.mxu0 %v2394_v20  ;;  %2057 = vmatmul.mubr.f32.vlgmr.msra.gmra.mxu1 %v3295_v0 }
  0x60   :  { %2067 = vmatprep.subr.mxu0 %v3295_v0  ;;  %2094 = vmatprep.subr.mxu1 %v3295_v0 }
  0x61   :  { %2068 = vmatpush3.msra.mxu0 %v2397_v21  ;;  %2095 = vmatpush3.msra.mxu1 %v2368_v4  ;;  %v2678_v21 = vand.u32 4294901760, %v110_v16 }
  0x62   :  { %2069 = vmatprep.subr.mxu0 %v3295_v0  ;;  %2096 = vmatprep.subr.mxu1 %v3295_v0 }
  0x63   :  { %2070 = vmatpush3.msra.mxu0 %v2411_v30  ;;  %2097 = vmatpush3.msra.mxu1 %v2370_v5  ;;  %v123_v30 = vld [vmem:[#allocation7 + $0xd8] sm:$0xff] }
  0x64   :  { %2071 = vmatprep.subr.mxu0 %v3295_v0  ;;  %2098 = vmatprep.subr.mxu1 %v3295_v0 }
  0x65   :  { %2072 = vmatpush3.msra.mxu0 %v2424_v34  ;;  %2099 = vmatpush3.msra.mxu1 %v2372_v6  ;;  %v107_v34 = vld [vmem:[#allocation7 + $0x58] sm:$0xff] }
  0x66   :  { %2073 = vmatprep.subr.mxu0 %v3295_v0  ;;  %2100 = vmatprep.subr.mxu1 %v3295_v0 }
  0x67   :  { %2074 = vmatpush3.msra.mxu0 %v2439_v43  ;;  %2101 = vmatpush3.msra.mxu1 %v2374_v10  ;;  %v82_v43 = vlaneseq }
  0x68   :  { %2075 = vmatprep.subr.mxu0 %v3295_v0  ;;  %2102 = vmatprep.subr.mxu1 %v3295_v0 }
  0x69   :  { %2076 = vmatpush3.msra.mxu0 %v2446_v47  ;;  %2103 = vmatpush3.msra.mxu1 %v2376_v11  ;;  %v2734_v31 = vand.u32 127, %v82_v43 }
  0x6a   :  { %2077 = vmatprep.subr.mxu0 %v3295_v0  ;;  %2104 = vmatprep.subr.mxu1 %v3295_v0 }
  0x6b   :  { %2078 = vmatpush3.msra.mxu0 %v2458_v54  ;;  %2105 = vmatpush3.msra.mxu1 %v2378_v12  ;;  %v122_v54 = vld [vmem:[#allocation7 + $0xd0] sm:$0xff]  ;;  %vm88_vm1 = vcmp.lt.s32.totalorder %v2734_v31, 18 }
  0x6c   :  { %2079 = vmatprep.subr.mxu0 %v3295_v0  ;;  %2106 = vmatprep.subr.mxu1 %v3295_v0  ;;  %v2741_v36 = vand.u32 4294901760, %v122_v54 }
  0x6d   :  { %2080 = vmatpush3.msra.mxu0 %v2470_v60  ;;  %2107 = vmatpush3.msra.mxu1 %v2387_v17 }
  0x6e   :  { %2081 = vmatprep.subr.mxu0 %v3295_v0  ;;  %2108 = vmatprep.subr.mxu1 %v3295_v0  ;;  %3351 = vst [vmem:[#allocation20_spill] sm:$0xff] %v2741_v36  ;;  %v2797_v9 = vsub.f32 %v122_v54, %v2741_v36 }
  0x6f   :  { %2082 = vmatpush3.msra.mxu0 %v2482_v3  ;;  %2109 = vmatpush3.msra.mxu1 %v2403_v25  ;;  %v2725_v3 = vand.u32 4294901760, %v123_v30 }
  0x70   :  { %2083 = vmatprep.subr.mxu0 %v3295_v0  ;;  %2110 = vmatprep.subr.mxu1 %v3295_v0 }
  0x71   :  { %2084 = vmatpush3.msra.mxu0 %v2494_v14  ;;  %2111 = vmatpush3.msra.mxu1 %v2407_v28  ;;  %3349 = vst [vmem:[#allocation18_spill] sm:$0xff] %v2725_v3  ;;  %v2769_v51 = vsub.f32 %v123_v30, %v2725_v3 }
  0x72   :  { %2085 = vmatprep.subr.mxu0 %v3295_v0  ;;  %2112 = vmatprep.subr.mxu1 %v3295_v0 }
  0x73   :  { %2086 = vmatpush3.msra.mxu0 %v2506_v33  ;;  %2113 = vmatpush3.msra.mxu1 %v2427_v35  ;;  %v121_v33 = vld [vmem:[#allocation7 + $0xc8] sm:$0xff] }
  0x74   :  { %2087 = vmatprep.subr.mxu0 %v3295_v0  ;;  %2114 = vmatprep.subr.mxu1 %v3295_v0  ;;  %v2785_v56 = vand.u32 4294901760, %v121_v33 }
  0x75   :  { %2088 = vmatpush3.msra.mxu0 %v2516_v39  ;;  %2115 = vmatpush3.msra.mxu1 %v2442_v45 }
  0x76   :  { %2089 = vmatprep.subr.mxu0 %v3295_v0  ;;  %2116 = vmatprep.subr.mxu1 %v3295_v0  ;;  %3353 = vst [vmem:[#allocation22_spill] sm:$0xff] %v2785_v56 }
  0x77   :  { %2090 = vmatpush3.msra.mxu0 %v2526_v49  ;;  %2091 = vmatprep.mubr.msk.f32.mxu0 %vm2323_vm0, %v3295_v0 }
  0x78   :  { %2117 = vmatpush3.msra.mxu1 %v2450_v48  ;;  %2092 = vmatmul.mubr.f32.vlgmr.msra.gmra.mxu0 %v3295_v0 }
  0x79   :  { %2118 = vmatprep.subr.mxu1 %v3295_v0  ;;  %2129 = vmatprep.subr.mxu0 %v3295_v0 }
  0x7a   :  { %2119 = vmatpush3.msra.mxu1 %v2466_v57  ;;  %2130 = vmatpush3.msra.mxu0 %v247_v22  ;;  %v109_v22 = vld [vmem:[#allocation7 + $0x68] sm:$0xff] }
  0x7b   :  { %2120 = vmatprep.subr.mxu1 %v3295_v0  ;;  %2131 = vmatprep.subr.mxu0 %v3295_v0 }
  0x7c   :  { %2121 = vmatpush3.msra.mxu1 %v2474_v61  ;;  %2132 = vmatpush3.msra.mxu0 %v254_v23 }
  0x7d   :  { %2122 = vmatprep.subr.mxu1 %v3295_v0  ;;  %2133 = vmatprep.subr.mxu0 %v3295_v0 }
  0x7e   :  { %2123 = vmatpush3.msra.mxu1 %v2486_v7  ;;  %2134 = vmatpush3.msra.mxu0 %v261_v24  ;;  %v108_v24 = vld [vmem:[#allocation7 + $0x60] sm:$0xff] }
  0x7f   :  { %2124 = vmatprep.subr.mxu1 %v3295_v0  ;;  %2135 = vmatprep.subr.mxu0 %v3295_v0  ;;  %v2710_v47 = vand.u32 4294901760, %v108_v24 }
  0x80   :  { %2125 = vmatpush3.msra.mxu1 %v2498_v19  ;;  %2126 = vmatprep.mubr.msk.f32.mxu1 %vm2323_vm0, %v3295_v0 }
  0x81   :  { %2136 = vmatpush3.msra.mxu0 %v268_v27  ;;  %2127 = vmatmul.mubr.f32.vlgmr.msra.gmra.mxu1 %v3295_v0  ;;  %3348 = vst [vmem:[#allocation17_spill] sm:$0xff] %v2710_v47 }
  0x82   :  { %2137 = vmatprep.subr.mxu0 %v3295_v0  ;;  %2164 = vmatprep.subr.mxu1 %v3295_v0 }
  0x83   :  { %2138 = vmatpush3.msra.mxu0 %v275_v29  ;;  %2165 = vmatpush3.msra.mxu1 %v2368_v4  ;;  %v127_v4 = vld [vmem:[#allocation7 + $0xf8] sm:$0xff]  ;;  %v2695_v29 = vand.u32 4294901760, %v109_v22 }
  0x84   :  { %2139 = vmatprep.subr.mxu0 %v3295_v0  ;;  %2166 = vmatprep.subr.mxu1 %v3295_v0 }
  0x85   :  { %2140 = vmatpush3.msra.mxu0 %v282_v40  ;;  %2167 = vmatpush3.msra.mxu1 %v2370_v5  ;;  %v126_v5 = vld [vmem:[#allocation7 + $0xf0] sm:$0xff]  ;;  %3346 = vst [vmem:[#allocation15_spill] sm:$0xff] %v2695_v29 }
  0x86   :  { %2141 = vmatprep.subr.mxu0 %v3295_v0  ;;  %2168 = vmatprep.subr.mxu1 %v3295_v0  ;;  %v2676_v20 = vand.u32 4294901760, %v126_v5 }
  0x87   :  { %2142 = vmatpush3.msra.mxu0 %v289_v46  ;;  %2169 = vmatpush3.msra.mxu1 %v2372_v6  ;;  %v2667_v6 = vand.u32 4294901760, %v127_v4 }
  0x88   :  { %2143 = vmatprep.subr.mxu0 %v3295_v0  ;;  %2170 = vmatprep.subr.mxu1 %v3295_v0  ;;  %v2704_v40 = vsub.f32 %v126_v5, %v2676_v20 }
  0x89   :  { %2144 = vmatpush3.msra.mxu0 %v296_v52  ;;  %2171 = vmatpush3.msra.mxu1 %v2374_v10  ;;  %v125_v10 = vld [vmem:[#allocation7 + $0xe8] sm:$0xff]  ;;  %v2691_v27 = vsub.f32 %v127_v4, %v2667_v6 }
  0x8a   :  { %2145 = vmatprep.subr.mxu0 %v3295_v0  ;;  %2172 = vmatprep.subr.mxu1 %v3295_v0  ;;  %v2688_v23 = vand.u32 4294901760, %v125_v10 }
  0x8b   :  { %2146 = vmatpush3.msra.mxu0 %v303_v58  ;;  %2173 = vmatpush3.msra.mxu1 %v2376_v11  ;;  %v2686_v11 = vsub.f32 %v111_v15, %v2669_v18  ;;  %v106_v58 = vld [vmem:[#allocation7 + $0x50] sm:$0xff]  ;;  %v2809_v15 = vand.u32 4294901760, %v120_v50 }
  0x8c   :  { %2147 = vmatprep.subr.mxu0 %v3295_v0  ;;  %2174 = vmatprep.subr.mxu1 %v3295_v0  ;;  %v2718_v60 = vsub.f32 %v125_v10, %v2688_v23  ;;  %v2743_v37 = vand.u32 4294901760, %v106_v58  ;;  %v119_v10 = vld [vmem:[#allocation7 + $0xb8] sm:$0xff] }
  0x8d   :  { %2148 = vmatpush3.msra.mxu0 %v310_v1  ;;  %2175 = vmatpush3.msra.mxu1 %v2378_v12  ;;  %v124_v12 = vld [vmem:[#allocation7 + $0xe0] sm:$0xff]  ;;  %v3290_v52 = vand.u32 4294901760, %v2686_v11  ;;  %v2723_v1 = vsub.f32 %v109_v22, %v2695_v29  ;;  %3355 = vst [vmem:[#allocation24_spill] sm:$0xff] %v2809_v15  ;;  %v3288_v22 = vand.u32 4294901760, %v2769_v51 }
  0x8e   :  { %2149 = vmatprep.subr.mxu0 %v3295_v0  ;;  %2176 = vmatprep.subr.mxu1 %v3295_v0  ;;  %v2708_v46 = vand.u32 4294901760, %v124_v12  ;;  %3352 = vst [vmem:[#allocation21_spill] sm:$0xff] %v2743_v37  ;;  %v2792_v49 = vsub.f32 %v106_v58, %v2743_v37  ;;  %v118_v58 = vld [vmem:[#allocation7 + $0xb0] sm:$0xff] }
  0x8f   :  { %2150 = vmatpush3.msra.mxu0 %v317_v13  ;;  %2177 = vmatpush3.msra.mxu1 %v2387_v17  ;;  %v2701_v17 = vsub.f32 %v110_v16, %v2678_v21  ;;  %v2727_v13 = vand.u32 4294901760, %v107_v34  ;;  %v2759_v42 = vsub.f32 %v2686_v11, %v3290_v52  ;;  %v2818_v16 = vand.u32 4294901760, %v104_v63 }
  0x90   :  { %2151 = vmatprep.subr.mxu0 %v3295_v0  ;;  %2178 = vmatprep.subr.mxu1 %v3295_v0  ;;  %3347 = vst [vmem:[#allocation16_spill] sm:$0xff] %v2708_v46 }
  0x91   :  { %2152 = vmatpush3.msra.mxu0 %v324_v32  ;;  %2179 = vmatpush3.msra.mxu1 %v2403_v25  ;;  %v3291_v25 = vand.u32 4294901760, %v2691_v27  ;;  %3350 = vst [vmem:[#allocation19_spill] sm:$0xff] %v2727_v13  ;;  %v3286_v14 = vand.u32 4294901760, %v2701_v17  ;;  %v2739_v32 = vsub.f32 %v108_v24, %v2710_v47  ;;  %v2765_v39 = vsub.f32 %v107_v34, %v2727_v13  ;;  %v100_v24 = vld [vmem:[#allocation7 + $0x20] sm:$0xff] }
  0x92   :  { %2153 = vmatprep.subr.mxu0 %v3295_v0  ;;  %2180 = vmatprep.subr.mxu1 %v3295_v0  ;;  %3356 = vst [vmem:[#allocation25_spill] sm:$0xff] %v2818_v16  ;;  %v2829_v34 = vand.u32 4294901760, %v103_v8 }
  0x93   :  { %2154 = vmatpush3.msra.mxu0 %v331_v38  ;;  %2181 = vmatpush3.msra.mxu1 %v2407_v28  ;;  %v3287_v28 = vand.u32 4294901760, %v2704_v40  ;;  %v105_v38 = vld [vmem:[#allocation7 + $0x48] sm:$0xff]  ;;  %v2754_v41 = vsub.f32 %v2691_v27, %v3291_v25  ;;  %v2783_v55 = vsub.f32 %v2701_v17, %v3286_v14  ;;  %v3284_v2 = vand.u32 4294901760, %v2739_v32 }
  0x94   :  { %2155 = vmatprep.subr.mxu0 %v3295_v0  ;;  %2182 = vmatprep.subr.mxu1 %v3295_v0  ;;  %v2787_v62 = vand.u32 4294901760, %v105_v38  ;;  %3357 = vst [vmem:[#allocation26_spill] sm:$0xff] %v2829_v34 }
  0x95   :  { %2156 = vmatpush3.msra.mxu0 %v338_v44  ;;  %2183 = vmatpush3.msra.mxu1 %v2427_v35  ;;  %v2746_v35 = vsub.f32 %v124_v12, %v2708_v46  ;;  %v3285_v44 = vand.u32 4294901760, %v2718_v60  ;;  %v3289_v12 = vand.u32 4294901760, %v2765_v39  ;;  %v2841_v54 = vsub.f32 %v2739_v32, %v3284_v2 }
  0x96   :  { %2157 = vmatprep.subr.mxu0 %v3295_v0  ;;  %2184 = vmatprep.subr.mxu1 %v3295_v0  ;;  %3354 = vst [vmem:[#allocation23_spill] sm:$0xff] %v2787_v62  ;;  %v2827_v30 = vsub.f32 %v105_v38, %v2787_v62  ;;  %v3292_v38 = vand.u32 4294901760, %v2797_v9  ;;  %v2854_v2 = vsub.f32 %v120_v50, %v2809_v15  ;;  %v117_v50 = vld [vmem:[#allocation7 + $0xa8] sm:$0xff]  ;;  %v3370_v31 = vand.u32 4294901760, %v2783_v55 }
  0x97   :  { %2158 = vmatpush3.msra.mxu0 %v345_v53  ;;  %2185 = vmatpush3.msra.mxu1 %v2442_v45  ;;  %v3283_v45 = vand.u32 4294901760, %v2723_v1  ;;  %v2778_v53 = vsub.f32 %v2704_v40, %v3287_v28  ;;  %v2807_v4 = vsub.f32 %v2718_v60, %v3285_v44  ;;  %v2860_v44 = vsub.f32 %v104_v63, %v2818_v16  ;;  %v101_v28 = vld [vmem:[#allocation7 + $0x28] sm:$0xff] }
  0x98   :  { %2159 = vmatprep.subr.mxu0 %v3295_v0  ;;  %2186 = vmatprep.subr.mxu1 %v3295_v0  ;;  %v2870_v14 = vsub.f32 %v2765_v39, %v3289_v12  ;;  %v2877_v63 = vand.u32 4294901760, %v118_v58  ;;  %v932_v52 = vand.u32 4294901760, %v2841_v54  ;;  %v2902_v54 = vand.u32 4294901760, %v101_v28 }
  0x99   :  { %2160 = vmatpush3.msra.mxu0 %v352_v59  ;;  %2161 = vmatprep.mubr.msk.f32.mxu0 %vm2323_vm0, %v3295_v0  ;;  %v3282_v59 = vand.u32 4294901760, %v2746_v35  ;;  %v2816_v5 = vsub.f32 %v2723_v1, %v3283_v45  ;;  %v3299_v45 = vand.u32 4294901760, %v2792_v49  ;;  %3359 = vst [vmem:[#allocation28_spill] sm:$0xff] %v2860_v44 }
  0x9a   :  { %2187 = vmatpush3.msra.mxu1 %v2450_v48  ;;  %2162 = vmatmul.mubr.f32.vlgmr.msra.gmra.mxu0 %v3295_v0  ;;  %v1023_v48 = vand.u32 4294901760, %v2754_v41  ;;  %v102_v41 = vld [vmem:[#allocation7 + $0x30] sm:$0xff]  ;;  %3360 = vst [vmem:[#allocation29_spill] sm:$0xff] %v2877_v63  ;;  %3363 = vst [vmem:[#allocation32_spill] sm:$0xff] %v2902_v54 }
  0x9b   :  { %2188 = vmatprep.subr.mxu1 %v3295_v0  ;;  %1779 = vmatprep.subr.mxu0 %v2667_v6  ;;  %v2836_v43 = vsub.f32 %v2746_v35, %v3282_v59  ;;  %v2850_v59 = vand.u32 4294901760, %v119_v10 }
  0x9c   :  { %2189 = vmatpush3.msra.mxu1 %v2466_v57  ;;  %1780 = vmatpush3.msra.mxu0 %v2669_v18  ;;  %v1030_v57 = vand.u32 4294901760, %v2778_v53  ;;  %v2845_v53 = vsub.f32 %v121_v33, %v2785_v56  ;;  %v925_v33 = vand.u32 4294901760, %v2816_v5  ;;  %v2879_v5 = vand.u32 4294901760, %v102_v41 }
  0x9d   :  { %2190 = vmatprep.subr.mxu1 %v3295_v0  ;;  %1781 = vmatprep.subr.mxu0 %v2676_v20  ;;  %3358 = vst [vmem:[#allocation27_spill] sm:$0xff] %v2850_v59  ;;  %v1044_v12 = vand.u32 4294901760, %v2836_v43  ;;  %v2900_v43 = vand.u32 4294901760, %v117_v50 }
  0x9e   :  { %2191 = vmatpush3.msra.mxu1 %v2474_v61  ;;  %1782 = vmatpush3.msra.mxu0 %v2678_v21  ;;  %v1037_v61 = vand.u32 4294901760, %v2807_v4  ;;  %v2865_v4 = vsub.f32 %v2769_v51, %v3288_v22  ;;  %3361 = vst [vmem:[#allocation30_spill] sm:$0xff] %v2879_v5  ;;  %v116_v22 = vld [vmem:[#allocation7 + $0xa0] sm:$0xff] }
  0x9f   :  { %2192 = vmatprep.subr.mxu1 %v3295_v0  ;;  %1783 = vmatprep.subr.mxu0 %v2688_v23  ;;  %3362 = vst [vmem:[#allocation31_spill] sm:$0xff] %v2900_v43 }
  0xa0   :  { %2193 = vmatpush3.msra.mxu1 %v2486_v7  ;;  %1784 = vmatpush3.msra.mxu0 %v2695_v29  ;;  %v2875_v7 = vsub.f32 %v103_v8, %v2829_v34  ;;  %v2890_v8 = vsub.f32 %v2797_v9, %v3292_v38  ;;  %v1051_v25 = vand.u32 4294901760, %v2865_v4  ;;  %v3364_v29 = vand.u32 4294901760, %v2759_v42 }
  0xa1   :  { %2194 = vmatprep.subr.mxu1 %v3295_v0  ;;  %1785 = vmatprep.subr.mxu0 %v2708_v46  ;;  %v2910_v46 = vsub.f32 %v119_v10, %v2850_v59  ;;  %v2916_v38 = vsub.f32 %v102_v41, %v2879_v5  ;;  %v94_v10 = vsel %vm88_vm1, %v79_v26, 0.0  ;;  %v2934_v41 = vand.u32 4294901760, %v116_v22 }
  0xa2   :  { %2195 = vmatpush3.msra.mxu1 %v2498_v19  ;;  %2196 = vmatprep.mubr.msk.f32.mxu1 %vm2323_vm0, %v3295_v0  ;;  %v2898_v19 = vsub.f32 %v2792_v49, %v3299_v45  ;;  %v99_v45 = vld [vmem:[#allocation7 + $0x18] sm:$0xff] }
  0xa3   :  { %1786 = vmatpush3.msra.mxu0 %v2710_v47  ;;  %2197 = vmatmul.mubr.f32.vlgmr.msra.gmra.mxu1 %v3295_v0  ;;  %v939_v47 = vand.u32 4294901760, %v2870_v14  ;;  %3365 = vst [vmem:[#allocation33_spill] sm:$0xff] %v2916_v38  ;;  %v2923_v14 = vand.u32 4294901760, %v100_v24  ;;  %v1058_v0 = vand.u32 4294901760, %v2890_v8  ;;  %v3371_v8 = vand.u32 4294901760, %v2854_v2 }
  0xa4   :  { %1787 = vmatprep.subr.mxu0 %v2725_v3  ;;  %1814 = vmatprep.subr.mxu1 %v1023_v48  ;;  %v3366_v48 = vand.u32 4294901760, %v2827_v30  ;;  %v946_v26 = vand.u32 4294901760, %v2898_v19  ;;  %v98_v3 = vld [vmem:[#allocation7 + $0x10] sm:$0xff] }
  0xa5   :  { %1788 = vmatpush3.msra.mxu0 %v2727_v13  ;;  %1815 = vmatpush3.msra.mxu1 %v3364_v29  ;;  %3367 = vst [vmem:[#allocation34_spill] sm:$0xff] %v2923_v14  ;;  %v3368_v29 = vand.u32 4294901760, %v2845_v53  ;;  %v115_v13 = vld [vmem:[#allocation7 + $0x98] sm:$0xff] }
  0xa6   :  { %v2921_v4 = vsub.f32 %v2827_v30, %v3366_v48  ;;  %1789 = vmatprep.subr.mxu0 %v2741_v36  ;;  %1816 = vmatprep.subr.mxu1 %v1030_v57  ;;  %v2937_v48 = vsub.f32 %v118_v58, %v2877_v63  ;;  %v2944_v57 = vsub.f32 %v101_v28, %v2902_v54  ;;  %v2951_v36 = vand.u32 4294901760, %v99_v45  ;;  %v114_v28 = vld [vmem:[#allocation7 + $0x90] sm:$0xff] }
  0xa7   :  { %v2932_v42 = vsub.f32 %v2845_v53, %v3368_v29  ;;  %1790 = vmatpush3.msra.mxu0 %v2743_v37  ;;  %1817 = vmatpush3.msra.mxu1 %v3370_v31  ;;  %v2949_v29 = vsub.f32 %v2854_v2, %v3371_v8  ;;  %v3372_v58 = vand.u32 4294901760, %v2860_v44  ;;  %v2961_v31 = vsub.f32 %v117_v50, %v2900_v43 }
  0xa8   :  { %3369 = vst [vmem:[#allocation35_spill] sm:$0xff] %v2937_v48  ;;  %1791 = vmatprep.subr.mxu0 %v2785_v56  ;;  %1818 = vmatprep.subr.mxu1 %v1037_v61  ;;  %v2963_v37 = vand.u32 4294901760, %v94_v10  ;;  %v953_v8 = vand.u32 4294901760, %v2921_v4  ;;  %v2968_v61 = vsub.f32 %v100_v24, %v2923_v14  ;;  %v2970_v56 = vand.u32 4294901760, %v115_v13 }
  0xa9   :  { %v2957_v55 = vsub.f32 %v2860_v44, %v3372_v58  ;;  %1792 = vmatpush3.msra.mxu0 %v2787_v62  ;;  %1819 = vmatpush3.msra.mxu1 %v925_v33  ;;  %v1065_v50 = vand.u32 4294901760, %v2932_v42  ;;  %v2976_v44 = vand.u32 4294901760, %v98_v3  ;;  %v113_v62 = vld [vmem:[#allocation7 + $0x88] sm:$0xff]  ;;  %v2979_v33 = vsub.f32 %v116_v22, %v2934_v41 }
  0xaa   :  { %3373 = vst [vmem:[#allocation36_spill] sm:$0xff] %v2963_v37  ;;  %3374 = vst [vmem:[#allocation37_spill] sm:$0xff] %v2968_v61  ;;  %1793 = vmatprep.subr.mxu0 %v2809_v15  ;;  %1820 = vmatprep.subr.mxu1 %v1044_v12  ;;  %v1072_v24 = vand.u32 4294901760, %v2949_v29  ;;  %v2984_v4 = vsub.f32 %v99_v45, %v2951_v36  ;;  %v2986_v58 = vand.u32 4294901760, %v114_v28  ;;  %v97_v42 = vld [vmem:[#allocation7 + $0x8] sm:$0xff]  ;;  %v3376_v22 = vand.u32 4294901760, %v2910_v46 }
  0xab   :  { %3375 = vst [vmem:[#allocation38_spill] sm:$0xff] %v2979_v33  ;;  %1794 = vmatpush3.msra.mxu0 %v2818_v16  ;;  %1821 = vmatpush3.msra.mxu1 %v932_v52  ;;  %v960_v19 = vand.u32 4294901760, %v2957_v55  ;;  %v112_v29 = vld [vmem:[#allocation7 + $0x80] sm:$0xff]  ;;  %v2996_v45 = vsub.f32 %v94_v10, %v2963_v37  ;;  %v3377_v12 = vand.u32 4294901760, %v2875_v7  ;;  %v3378_v10 = vand.u32 4294901760, %v2937_v48 }
  0xac   :  { %1795 = vmatprep.subr.mxu0 %v2850_v59  ;;  %1822 = vmatprep.subr.mxu1 %v1051_v25  ;;  %v1078_v16 = vsub.f32 %v2910_v46, %v3376_v22  ;;  %v96_v15 = vld [vmem:[#allocation7] sm:$0xff]  ;;  %v3002_v59 = vand.u32 4294901760, %v113_v62  ;;  %v3006_v22 = vsub.f32 %v115_v13, %v2970_v56  ;;  %v3379_v13 = vand.u32 4294901760, %v2916_v38 }
  0xad   :  { %1796 = vmatpush3.msra.mxu0 %v2829_v34  ;;  %1823 = vmatpush3.msra.mxu1 %v939_v47  ;;  %v966_v25 = vsub.f32 %v2875_v7, %v3377_v12  ;;  %v1085_v52 = vsub.f32 %v2937_v48, %v3378_v10  ;;  %v3013_v47 = vsub.f32 %v98_v3, %v2976_v44  ;;  %v3015_v34 = vand.u32 4294901760, %v97_v42 }
  0xae   :  { %1797 = vmatprep.subr.mxu0 %v2877_v63  ;;  %1824 = vmatprep.subr.mxu1 %v1058_v0  ;;  %v973_v55 = vsub.f32 %v2916_v38, %v3379_v13  ;;  %v3022_v63 = vand.u32 4294901760, %v112_v29  ;;  %v3024_v0 = vand.u32 4294901760, %v96_v15  ;;  %v3027_v10 = vsub.f32 %v114_v28, %v2986_v58 }
  0xaf   :  { %1798 = vmatpush3.msra.mxu0 %v2879_v5  ;;  %1825 = vmatpush3.msra.mxu1 %v946_v26  ;;  %v1079_v3 = vand.u32 4294901760, %v1078_v16  ;;  %v3380_v12 = vand.u32 4294901760, %v2961_v31  ;;  %v3334_v26 = vand.u32 4294901760, %v2968_v61  ;;  %v967_v13 = vand.u32 4294901760, %v966_v25 }
  0xb0   :  { %1799 = vmatprep.subr.mxu0 %v2900_v43  ;;  %1826 = vmatprep.subr.mxu1 %v1065_v50  ;;  %v3381_v38 = vand.u32 4294901760, %v2944_v57  ;;  %v3041_v16 = vsub.f32 %v113_v62, %v3002_v59  ;;  %v1086_v50 = vand.u32 4294901760, %v1085_v52  ;;  %v3382_v48 = vand.u32 4294901760, %v2979_v33 }
  0xb1   :  { %v1092_v5 = vsub.f32 %v2961_v31, %v3380_v12  ;;  %1800 = vmatpush3.msra.mxu0 %v2902_v54  ;;  %1827 = vmatpush3.msra.mxu1 %v953_v8  ;;  %v3045_v12 = vsub.f32 %v97_v42, %v3015_v34  ;;  %v3335_v25 = vand.u32 4294901760, %v2984_v4  ;;  %v3053_v62 = vsub.f32 %v96_v15, %v3024_v0 }
  0xb2   :  { %v980_v28 = vsub.f32 %v2944_v57, %v3381_v38  ;;  %1801 = vmatprep.subr.mxu0 %v2934_v41  ;;  %1828 = vmatprep.subr.mxu1 %v1072_v24  ;;  %v1099_v8 = vsub.f32 %v2979_v33, %v3382_v48  ;;  %v974_v38 = vand.u32 4294901760, %v973_v55  ;;  %v3057_v24 = vsub.f32 %v112_v29, %v3022_v63 }
  0xb3   :  { %1802 = vmatpush3.msra.mxu0 %v2923_v14  ;;  %1829 = vmatpush3.msra.mxu1 %v960_v19  ;;  %3383 = vst [vmem:[#allocation39_spill] sm:$0xff] %v3053_v62  ;;  %v1093_v42 = vand.u32 4294901760, %v1092_v5  ;;  %v987_v48 = vsub.f32 %v2968_v61, %v3334_v26  ;;  %v3384_v52 = vand.u32 4294901760, %v2996_v45  ;;  %v3336_v15 = vand.u32 4294901760, %v3013_v47 }
  0xb4   :  { %1803 = vmatprep.subr.mxu0 %v2970_v56  ;;  %1830 = vmatprep.subr.mxu1 %v1079_v3  ;;  %v981_v55 = vand.u32 4294901760, %v980_v28  ;;  %v3385_v29 = vand.u32 4294901760, %v3006_v22  ;;  %v3337_v5 = vand.u32 4294901760, %v3041_v16  ;;  %v1100_v3 = vand.u32 4294901760, %v1099_v8 }
  0xb5   :  { %v899_v19 = vsub.f32 %v2996_v45, %v3384_v52  ;;  %1804 = vmatpush3.msra.mxu0 %v2951_v36  ;;  %1831 = vmatpush3.msra.mxu1 %v967_v13  ;;  %v994_v52 = vsub.f32 %v2984_v4, %v3335_v25  ;;  %v3386_v13 = vand.u32 4294901760, %v3027_v10  ;;  %v1001_v25 = vsub.f32 %v3013_v47, %v3336_v15 }
  0xb6   :  { %v1106_v43 = vsub.f32 %v3006_v22, %v3385_v29  ;;  %1805 = vmatprep.subr.mxu0 %v2986_v58  ;;  %1832 = vmatprep.subr.mxu1 %v1086_v50  ;;  %v3338_v29 = vand.u32 4294901760, %v3057_v24  ;;  %v988_v50 = vand.u32 4294901760, %v987_v48  ;;  %v3387_v48 = vand.u32 4294901760, %v3045_v12 }
  0xb7   :  { %1806 = vmatpush3.msra.mxu0 %v2976_v44  ;;  %1833 = vmatpush3.msra.mxu1 %v974_v38  ;;  %v1113_v28 = vsub.f32 %v3027_v10, %v3386_v13  ;;  %v900_v8 = vand.u32 4294901760, %v899_v19  ;;  %v1120_v13 = vsub.f32 %v3041_v16, %v3337_v5  ;;  %v3388_v15 = vmov 0.0  }
  0xb8   :  { %1807 = vmatprep.subr.mxu0 %v3002_v59  ;;  %1834 = vmatprep.subr.mxu1 %v1093_v42  ;;  %v1107_v38 = vand.u32 4294901760, %v1106_v43  ;;  %v995_v42 = vand.u32 4294901760, %v994_v52  ;;  %v1008_v19 = vsub.f32 %v3045_v12, %v3387_v48  ;;  %v1127_v43 = vsub.f32 %v3057_v24, %v3338_v29  ;;  %v3405_v29 = vld [vmem:[#allocation26_spill] sm:$0xff] }
  0xb9   :  { %1808 = vmatpush3.msra.mxu0 %v3015_v34  ;;  %1835 = vmatpush3.msra.mxu1 %v981_v55  ;;  %v1114_v26 = vand.u32 4294901760, %v1113_v28  ;;  %v1002_v55 = vand.u32 4294901760, %v1001_v25  ;;  %v3389_v5 = vand.u32 4294901760, %v3053_v62  ;;  %v1121_v52 = vand.u32 4294901760, %v1120_v13  ;;  %v3395_v13 = vld [vmem:[#allocation19_spill] sm:$0xff] }
  0xba   :  { %1809 = vmatprep.subr.mxu0 %v3022_v63  ;;  %1836 = vmatprep.subr.mxu1 %v1100_v3  ;;  %v1009_v48 = vand.u32 4294901760, %v1008_v19  ;;  %v1128_v28 = vand.u32 4294901760, %v1127_v43  ;;  %v3397_v19 = vld [vmem:[#allocation20_spill] sm:$0xff]  ;;  %v3398_v43 = vld [vmem:[#allocation33_spill] sm:$0xff] }
  0xbb   :  { %1810 = vmatpush3.msra.mxu0 %v3024_v0  ;;  %895 = vmatprep.mubr.f32.mxu0 %v3388_v15  ;;  %v1015_v3 = vsub.f32 %v3053_v62, %v3389_v5  ;;  %v3391_v5 = vld [vmem:[#allocation16_spill] sm:$0xff] }
  0xbc   :  { %1837 = vmatpush3.msra.mxu1 %v988_v50  ;;  %901 = vmatmul.mubr.f32.vlgmr.msra.gmra.mxu0 %v900_v8  ;;  %v3392_v50 = vld [vmem:[#allocation28_spill] sm:$0xff]  ;;  %v3393_v8 = vld [vmem:[#allocation17_spill] sm:$0xff] }
  0xbd   :  { %1838 = vmatprep.subr.mxu1 %v1107_v38  ;;  %1849 = vmatprep.subr.mxu0 %v2691_v27  ;;  %v1016_v25 = vand.u32 4294901760, %v1015_v3  ;;  %v3394_v38 = vld [vmem:[#allocation18_spill] sm:$0xff] }
  0xbe   :  { %1839 = vmatpush3.msra.mxu1 %v995_v42  ;;  %1850 = vmatpush3.msra.mxu0 %v2686_v11  ;;  %v3396_v42 = vld [vmem:[#allocation35_spill] sm:$0xff]  ;;  %v3400_v3 = vld [vmem:[#allocation22_spill] sm:$0xff] }
  0xbf   :  { %1840 = vmatprep.subr.mxu1 %v1114_v26  ;;  %1851 = vmatprep.subr.mxu0 %v2704_v40  ;;  %v3390_v26 = vld [vmem:[#allocation15_spill] sm:$0xff] }
  0xc0   :  { %1841 = vmatpush3.msra.mxu1 %v1002_v55  ;;  %1852 = vmatpush3.msra.mxu0 %v2701_v17  ;;  %v3399_v55 = vld [vmem:[#allocation21_spill] sm:$0xff] }
  0xc1   :  { %1842 = vmatprep.subr.mxu1 %v1121_v52  ;;  %1853 = vmatprep.subr.mxu0 %v2718_v60  ;;  %v3401_v52 = vld [vmem:[#allocation23_spill] sm:$0xff] }
  0xc2   :  { %1843 = vmatpush3.msra.mxu1 %v1009_v48  ;;  %1854 = vmatpush3.msra.mxu0 %v2723_v1  ;;  %v3402_v48 = vld [vmem:[#allocation24_spill] sm:$0xff] }
  0xc3   :  { %1844 = vmatprep.subr.mxu1 %v1128_v28  ;;  %1855 = vmatprep.subr.mxu0 %v2746_v35  ;;  %v3403_v28 = vld [vmem:[#allocation25_spill] sm:$0xff] }
  0xc4   :  { %1845 = vmatpush3.msra.mxu1 %v1016_v25  ;;  %1131 = vmatprep.mubr.f32.mxu1 %v3388_v15  ;;  %v3404_v25 = vld [vmem:[#allocation27_spill] sm:$0xff] }
  0xc5   :  { %1856 = vmatpush3.msra.mxu0 %v2739_v32  ;;  %1133 = vmatmul.mubr.f32.vlgmr.msra.gmra.mxu1 %v2963_v37  ;;  %v3406_v37 = vld [vmem:[#allocation29_spill] sm:$0xff] }
  0xc6   :  { %1857 = vmatprep.subr.mxu0 %v2769_v51  ;;  %1884 = vmatprep.subr.mxu1 %v2667_v6 }
  0xc7   :  { %1858 = vmatpush3.msra.mxu0 %v2765_v39  ;;  %1885 = vmatpush3.msra.mxu1 %v2669_v18 }
  0xc8   :  { %1859 = vmatprep.subr.mxu0 %v2797_v9  ;;  %1886 = vmatprep.subr.mxu1 %v2676_v20 }
  0xc9   :  { %1860 = vmatpush3.msra.mxu0 %v2792_v49  ;;  %1887 = vmatpush3.msra.mxu1 %v2678_v21 }
  0xca   :  { %1861 = vmatprep.subr.mxu0 %v2845_v53  ;;  %1888 = vmatprep.subr.mxu1 %v2688_v23 }
  0xcb   :  { %1862 = vmatpush3.msra.mxu0 %v2827_v30  ;;  %1889 = vmatpush3.msra.mxu1 %v3390_v26 }
  0xcc   :  { %1863 = vmatprep.subr.mxu0 %v2854_v2  ;;  %1890 = vmatprep.subr.mxu1 %v3391_v5 }
  0xcd   :  { %1864 = vmatpush3.msra.mxu0 %v3392_v50  ;;  %1891 = vmatpush3.msra.mxu1 %v3393_v8 }
  0xce   :  { %1865 = vmatprep.subr.mxu0 %v2910_v46  ;;  %1892 = vmatprep.subr.mxu1 %v3394_v38 }
  0xcf   :  { %1866 = vmatpush3.msra.mxu0 %v2875_v7  ;;  %1893 = vmatpush3.msra.mxu1 %v3395_v13 }
  0xd0   :  { %1867 = vmatprep.subr.mxu0 %v3396_v42  ;;  %1894 = vmatprep.subr.mxu1 %v3397_v19 }
  0xd1   :  { %1868 = vmatpush3.msra.mxu0 %v3398_v43  ;;  %1895 = vmatpush3.msra.mxu1 %v3399_v55 }
  0xd2   :  { %1869 = vmatprep.subr.mxu0 %v2961_v31  ;;  %1896 = vmatprep.subr.mxu1 %v3400_v3 }
  0xd3   :  { %1870 = vmatpush3.msra.mxu0 %v2944_v57  ;;  %1897 = vmatpush3.msra.mxu1 %v3401_v52 }
  0xd4   :  { %1871 = vmatprep.subr.mxu0 %v2979_v33  ;;  %1898 = vmatprep.subr.mxu1 %v3402_v48  ;;  %v3407_v33 = vld [vmem:[#allocation30_spill] sm:$0xff] }
  0xd5   :  { %1872 = vmatpush3.msra.mxu0 %v2968_v61  ;;  %1899 = vmatpush3.msra.mxu1 %v3403_v28  ;;  %v3408_v61 = vld [vmem:[#allocation31_spill] sm:$0xff] }
  0xd6   :  { %1873 = vmatprep.subr.mxu0 %v3006_v22  ;;  %1900 = vmatprep.subr.mxu1 %v3404_v25 }
  0xd7   :  { %1874 = vmatpush3.msra.mxu0 %v2984_v4  ;;  %1901 = vmatpush3.msra.mxu1 %v3405_v29 }
  0xd8   :  { %1875 = vmatprep.subr.mxu0 %v3027_v10  ;;  %1902 = vmatprep.subr.mxu1 %v3406_v37 }
  0xd9   :  { %1876 = vmatpush3.msra.mxu0 %v3013_v47  ;;  %1903 = vmatpush3.msra.mxu1 %v3407_v33 }
  0xda   :  { %1877 = vmatprep.subr.mxu0 %v3041_v16  ;;  %1904 = vmatprep.subr.mxu1 %v3408_v61  ;;  %v3409_v61 = vand.u32 4294901760, %v2691_v27  ;;  %v3413_v27 = vand.u32 4294901760, %v2718_v60  ;;  %v3417_v60 = vand.u32 4294901760, %v2996_v45 }
  0xdb   :  { %1878 = vmatpush3.msra.mxu0 %v3045_v12  ;;  %1905 = vmatpush3.msra.mxu1 %v2902_v54  ;;  %v3410_v54 = vand.u32 4294901760, %v2686_v11  ;;  %v3414_v11 = vand.u32 4294901760, %v2723_v1  ;;  %v3419_v1 = vand.u32 4294901760, %v2765_v39  ;;  %v3428_v39 = vand.u32 4294901760, %v3396_v42 }
  0xdc   :  { %1879 = vmatprep.subr.mxu0 %v3057_v24  ;;  %1906 = vmatprep.subr.mxu1 %v2934_v41 }
  0xdd   :  { %1880 = vmatpush3.msra.mxu0 %v3053_v62  ;;  %1268 = vmatprep.mubr.f32.mxu0 %v3388_v15  ;;  %v3411_v62 = vand.u32 4294901760, %v2704_v40  ;;  %v3415_v40 = vand.u32 4294901760, %v2746_v35  ;;  %v3420_v35 = vand.u32 4294901760, %v2797_v9  ;;  %v3432_v9 = vld [vmem:[#allocation38_spill] sm:$0xff] }
  0xde   :  { %1907 = vmatpush3.msra.mxu1 %v2923_v14  ;;  %1271 = vmatmul.mubr.f32.vlgmr.msra.gmra.mxu0 %v2996_v45  ;;  %v3412_v14 = vand.u32 4294901760, %v2701_v17  ;;  %v3416_v17 = vand.u32 4294901760, %v2739_v32  ;;  %v3421_v32 = vand.u32 4294901760, %v2792_v49  ;;  %v3429_v49 = vand.u32 4294901760, %v3398_v43 }
  0xdf   :  { %1908 = vmatprep.subr.mxu1 %v2970_v56  ;;  %1919 = vmatprep.subr.mxu0 %v3409_v61  ;;  %v3439_v61 = vand.u32 4294901760, %v3013_v47  ;;  %v3440_v45 = vand.u32 4294901760, %v3041_v16  ;;  %v3448_v16 = vld [vmem:[#allocation36_spill] sm:$0xff] }
  0xe0   :  { %1909 = vmatpush3.msra.mxu1 %v2951_v36  ;;  %1920 = vmatpush3.msra.mxu0 %v3410_v54  ;;  %v3418_v54 = vand.u32 4294901760, %v2769_v51  ;;  %v3422_v51 = vand.u32 4294901760, %v2845_v53  ;;  %v3434_v53 = vld [vmem:[#allocation37_spill] sm:$0xff] }
  0xe1   :  { %1910 = vmatprep.subr.mxu1 %v2986_v58  ;;  %1921 = vmatprep.subr.mxu0 %v3411_v62  ;;  %v3443_v62 = vld [vmem:[#allocation32_spill] sm:$0xff] }
  0xe2   :  { %1911 = vmatpush3.msra.mxu1 %v2976_v44  ;;  %1922 = vmatpush3.msra.mxu0 %v3412_v14  ;;  %v3436_v14 = vand.u32 4294901760, %v3006_v22  ;;  %v3441_v22 = vld [vmem:[#allocation31_spill] sm:$0xff] }
  0xe3   :  { %1912 = vmatprep.subr.mxu1 %v3002_v59  ;;  %1923 = vmatprep.subr.mxu0 %v3413_v27 }
  0xe4   :  { %1913 = vmatpush3.msra.mxu1 %v3015_v34  ;;  %1924 = vmatpush3.msra.mxu0 %v3414_v11 }
  0xe5   :  { %1914 = vmatprep.subr.mxu1 %v3022_v63  ;;  %1925 = vmatprep.subr.mxu0 %v3415_v40 }
  0xe6   :  { %1915 = vmatpush3.msra.mxu1 %v3024_v0  ;;  %1375 = vmatprep.mubr.f32.mxu1 %v3388_v15 }
  0xe7   :  { %1926 = vmatpush3.msra.mxu0 %v3416_v17  ;;  %1379 = vmatmul.mubr.f32.vlgmr.msra.gmra.mxu1 %v3417_v60 }
  0xe8   :  { %1927 = vmatprep.subr.mxu0 %v3418_v54  ;;  %1954 = vmatprep.subr.mxu1 %v2667_v6  ;;  %v3423_v6 = vand.u32 4294901760, %v2827_v30  ;;  %v3433_v30 = vand.u32 4294901760, %v3432_v9 }
  0xe9   :  { %1928 = vmatpush3.msra.mxu0 %v3419_v1  ;;  %1955 = vmatpush3.msra.mxu1 %v2669_v18  ;;  %v3424_v18 = vand.u32 4294901760, %v2854_v2  ;;  %v3431_v2 = vand.u32 4294901760, %v2944_v57  ;;  %v3437_v57 = vand.u32 4294901760, %v2984_v4  ;;  %v3442_v4 = vand.u32 4294901760, %v3045_v12 }
  0xea   :  { %1929 = vmatprep.subr.mxu0 %v3420_v35  ;;  %1956 = vmatprep.subr.mxu1 %v2676_v20  ;;  %v3425_v20 = vand.u32 4294901760, %v3392_v50 }
  0xeb   :  { %1930 = vmatpush3.msra.mxu0 %v3421_v32  ;;  %1957 = vmatpush3.msra.mxu1 %v2678_v21  ;;  %v3426_v21 = vand.u32 4294901760, %v2910_v46  ;;  %v3430_v46 = vand.u32 4294901760, %v2961_v31  ;;  %v3438_v31 = vand.u32 4294901760, %v3027_v10  ;;  %v3444_v10 = vand.u32 4294901760, %v3057_v24 }
  0xec   :  { %1931 = vmatprep.subr.mxu0 %v3422_v51  ;;  %1958 = vmatprep.subr.mxu1 %v2688_v23  ;;  %v3427_v23 = vand.u32 4294901760, %v2875_v7  ;;  %v3435_v7 = vand.u32 4294901760, %v3434_v53 }
  0xed   :  { %1932 = vmatpush3.msra.mxu0 %v3423_v6  ;;  %1959 = vmatpush3.msra.mxu1 %v3390_v26 }
  0xee   :  { %1933 = vmatprep.subr.mxu0 %v3424_v18  ;;  %1960 = vmatprep.subr.mxu1 %v3391_v5 }
  0xef   :  { %1934 = vmatpush3.msra.mxu0 %v3425_v20  ;;  %1961 = vmatpush3.msra.mxu1 %v3393_v8 }
  0xf0   :  { %1935 = vmatprep.subr.mxu0 %v3426_v21  ;;  %1962 = vmatprep.subr.mxu1 %v3394_v38 }
  0xf1   :  { %1936 = vmatpush3.msra.mxu0 %v3427_v23  ;;  %1963 = vmatpush3.msra.mxu1 %v3395_v13 }
  0xf2   :  { %1937 = vmatprep.subr.mxu0 %v3428_v39  ;;  %1964 = vmatprep.subr.mxu1 %v3397_v19 }
  0xf3   :  { %1938 = vmatpush3.msra.mxu0 %v3429_v49  ;;  %1965 = vmatpush3.msra.mxu1 %v3399_v55 }
  0xf4   :  { %1939 = vmatprep.subr.mxu0 %v3430_v46  ;;  %1966 = vmatprep.subr.mxu1 %v3400_v3 }
  0xf5   :  { %1940 = vmatpush3.msra.mxu0 %v3431_v2  ;;  %1967 = vmatpush3.msra.mxu1 %v3401_v52 }
  0xf6   :  { %1941 = vmatprep.subr.mxu0 %v3433_v30  ;;  %1968 = vmatprep.subr.mxu1 %v3402_v48 }
  0xf7   :  { %1942 = vmatpush3.msra.mxu0 %v3435_v7  ;;  %1969 = vmatpush3.msra.mxu1 %v3403_v28 }
  0xf8   :  { %1943 = vmatprep.subr.mxu0 %v3436_v14  ;;  %1970 = vmatprep.subr.mxu1 %v3404_v25 }
  0xf9   :  { %1944 = vmatpush3.msra.mxu0 %v3437_v57  ;;  %1971 = vmatpush3.msra.mxu1 %v3405_v29 }
  0xfa   :  { %1945 = vmatprep.subr.mxu0 %v3438_v31  ;;  %1972 = vmatprep.subr.mxu1 %v3406_v37  ;;  %v3445_v37 = vld [vmem:[#allocation39_spill] sm:$0xff] }
  0xfb   :  { %1946 = vmatpush3.msra.mxu0 %v3439_v61  ;;  %1973 = vmatpush3.msra.mxu1 %v3407_v33  ;;  %v3446_v47 = vand.u32 4294901760, %v3445_v37  ;;  %v3447_v33 = vld [vmem:[#allocation34_spill] sm:$0xff] }
  0xfc   :  { %1947 = vmatprep.subr.mxu0 %v3440_v45  ;;  %1974 = vmatprep.subr.mxu1 %v3441_v22 }
  0xfd   :  { %1948 = vmatpush3.msra.mxu0 %v3442_v4  ;;  %1975 = vmatpush3.msra.mxu1 %v3443_v62 }
  0xfe   :  { %1949 = vmatprep.subr.mxu0 %v3444_v10  ;;  %1976 = vmatprep.subr.mxu1 %v2934_v41 }
  0xff   :  { %1950 = vmatpush3.msra.mxu0 %v3446_v47  ;;  %1545 = vmatprep.mubr.f32.mxu0 %v3388_v15 }
 0x100   :  { %1977 = vmatpush3.msra.mxu1 %v3447_v33  ;;  %1547 = vmatmul.mubr.f32.vlgmr.msra.gmra.mxu0 %v3448_v16 }
 0x101   :  { %1978 = vmatprep.subr.mxu1 %v2970_v56  ;;  %1649 = vmatprep.mubr.f32.mxu1 %v3388_v15 }
 0x102   :  { %1979 = vmatpush3.msra.mxu1 %v2951_v36 }
 0x103   :  { %1980 = vmatprep.subr.mxu1 %v2986_v58 }
 0x104   :  { %1981 = vmatpush3.msra.mxu1 %v2976_v44 }
 0x105   :  { %1982 = vmatprep.subr.mxu1 %v3002_v59 }
 0x106   :  { %1983 = vmatpush3.msra.mxu1 %v3015_v34 }
 0x107   :  { %1984 = vmatprep.subr.mxu1 %v3022_v63 }
 0x108   :  { %1985 = vmatpush3.msra.mxu1 %v3024_v0 }
 0x109   :  { %1651 = vmatmul.mubr.f32.vlgmr.msra.gmra.mxu1 %v3448_v16 }
 0x118   :  { %v240_v41 = vpop.f32.mrf.mxu0 }
 0x11a   :  { %v2023_v56 = vpop.f32.mrf.mxu0 }
 0x11f   :  { %v391_v12 = vpop.f32.mrf.mxu1 }
 0x120   :  { %v392_v24 = vadd.f32 %v391_v12, %v240_v41 }
 0x121   :  { %v2058_v15 = vpop.f32.mrf.mxu1 }
 0x138   :  { %v495_v36 = vpop.f32.mrf.mxu0 }
 0x139   :  { %v496_v29 = vadd.f32 %v495_v36, %v392_v24 }
 0x13a   :  { %v2093_v58 = vpop.f32.mrf.mxu0 }
 0x141   :  { %v584_v26 = vpop.f32.mrf.mxu1 }
 0x142   :  { %v585_v44 = vadd.f32 %v584_v26, %v496_v29 }
 0x143   :  { %v2128_v5 = vpop.f32.mrf.mxu1 }
 0x15a   :  { %v703_v59 = vpop.f32.mrf.mxu0 }
 0x15b   :  { %v704_v50 = vadd.f32 %v703_v59, %v585_v44 }
 0x15c   :  { %v2163_v34 = vpop.f32.mrf.mxu0 }
 0x163   :  { %v790_v8 = vpop.f32.mrf.mxu1 }
 0x164   :  { %v791_v63 = vadd.f32 %v790_v8, %v704_v50 }
 0x165   :  { %v2198_v38 = vpop.f32.mrf.mxu1 }
 0x17c   :  { %v1811_v0 = vpop.f32.mrf.mxu0 }
 0x17e   :  { %v1812_v13 = vpop.f32.mrf.mxu0 }
 0x17f   :  { %v1813_v52 = vadd.f32 %v1812_v13, %v1811_v0 }
 0x181   :  { %v903_v27 = vadd.f32 %v1813_v52, %v791_v63 }
 0x185   :  { %v1846_v42 = vpop.f32.mrf.mxu1 }
 0x187   :  { %v1847_v43 = vpop.f32.mrf.mxu1 }
 0x188   :  { %v1848_v28 = vadd.f32 %v1847_v43, %v1846_v42 }
 0x18a   :  { %v1135_v17 = vadd.f32 %v1848_v28, %v903_v27 }
 0x19e   :  { %v1881_v19 = vpop.f32.mrf.mxu0 }
 0x1a0   :  { %v1882_v55 = vpop.f32.mrf.mxu0 }
 0x1a1   :  { %v1883_v11 = vadd.f32 %v1882_v55, %v1881_v19 }
 0x1a3   :  { %v1273_v54 = vadd.f32 %v1883_v11, %v1135_v17 }
 0x1a7   :  { %v1916_v3 = vpop.f32.mrf.mxu1 }
 0x1a9   :  { %v1917_v25 = vpop.f32.mrf.mxu1 }
 0x1aa   :  { %v1918_v60 = vadd.f32 %v1917_v25, %v1916_v3 }
 0x1ac   :  { %v1381_v32 = vadd.f32 %v1918_v60, %v1273_v54 }
 0x1c0   :  { %v1951_v48 = vpop.f32.mrf.mxu0 }
 0x1c2   :  { %v1952_v40 = vpop.f32.mrf.mxu0 }
 0x1c3   :  { %v1953_v1 = vadd.f32 %v1952_v40, %v1951_v48 }
 0x1c5   :  { %v1549_v6 = vadd.f32 %v1953_v1, %v1381_v32 }
 0x1c9   :  { %v1986_v35 = vpop.f32.mrf.mxu1 }
 0x1cb   :  { %v1987_v51 = vpop.f32.mrf.mxu1 }
 0x1cc   :  { %v1988_v18 = vadd.f32 %v1987_v51, %v1986_v35 }
 0x1ce   :  { %v1653_v20 = vadd.f32 %v1988_v18, %v1549_v6 }
 0x1d0   :  { %v1656_v21 = vmul.f32 0.25, %v1653_v20 }
 0x1d2   :  { %1657 = vst [vmem:[#allocation10] sm:$0xff] %v1656_v21 }
 0x1d3   :  { %2299 = shalt.err (!%p2296_p10)
}
 0x1d4   :  { %1667 = dma.vmem_to_hbm [thread:$0]  %s1665_s3, 128, %s3281_s4, [#allocation4]  }
 0x1d5   :  { %2314 = dma.done.wait [#allocation4], 128  }
 0x1d6   :  { %2315 = vsyncadd [#allocation4], 4294967168 }
 0x1d7   :  { %1671 = vsyncpa [#allocation3], 1 }
 0x1d8   :  { %1672 = vsyncpa [#allocation6], 1 }
 0x1d9   :  { %1673 = vsyncpa [#allocation9], 1 }
 0x1da   :  { %1674 = vsyncpa [#allocation4], 1 }

</bundles_post_ra>
